<compile_context>
chip_gen: v6e
topology: v6e:2x2x1
jax: 0.10.0
libtpu: 0.0.40
codegen_flags: <defaults>
</compile_context>

<pallas_src>
import functools

import jax
import jax.numpy as jnp
import numpy as np
from jax.experimental import pallas as pl
from jax.experimental.pallas import tpu as pltpu

_LANE = 128
_GATHER_UNROLL = 8            # python-unrolled DMA issue (tile_m % 8 == 0 always)
_MIN_DMA_ROW_BYTES = 512      # below this, per-row DMAs are descriptor-bound


def _round_up(x, m):
    return ((x + m - 1) // m) * m


def _vmem_budget_bytes():
    """~75% of physical per-core VMEM; conservative 48 MiB if it can't be read."""
    try:
        cap = int(pltpu.get_tpu_info().vmem_capacity_bytes)
    except Exception:
        cap = 64 << 20            # v7x-sized fallback -> safe everywhere
    return (cap * 3) // 4


def _pick_tile_m(M, in_dim, n_pad, z_itemsize, w_itemsize, budget, cap_rows):
    """Largest 16-multiple tile_m whose working set fits the VMEM budget while
    keeping >=2 grid steps when M is large enough to split (megacore)."""
    fixed = 2 * in_dim * n_pad * w_itemsize + 2 * n_pad * 4 + (1 << 20)
    per_row = 2 * in_dim * z_itemsize + 2 * n_pad * 4
    cap = _round_up(M, 16)
    if M > 16:
        cap = min(cap, _round_up(-(-M // 2), 16))      # >= 2 grid steps
    cap = min(cap, cap_rows)
    tile_m = 16
    for t in (1024, 512, 256, 128, 64, 32, 16):
        if t <= cap and fixed + t * per_row <= budget:
            tile_m = t
            break
    return tile_m, fixed + tile_m * per_row


# --------------------------------------------------------------------------
# kernels
# --------------------------------------------------------------------------
def _finish_tile(logits, bias_ref, o_ref, apply_softmax, masked):
    """Shared epilogue: optional masked softmax over the padded class axis."""
    if apply_softmax:
        if masked:
            logits = logits + bias_ref[...]            # 0 valid / -1e30 padded cols
        mx = jnp.max(logits, axis=-1, keepdims=True)
        e = jnp.exp(logits - mx)
        s = jnp.sum(e, axis=-1, keepdims=True)
        o_ref[...] = (e * pl.reciprocal(s, approx=True)).astype(o_ref.dtype)
    else:
        o_ref[...] = logits.astype(o_ref.dtype)


def _take_kernel(apply_softmax, masked, zsel_ref, w_ref, bias_ref, o_ref):
    """Gather done by XLA in the wrapper; kernel = matmul + (masked) softmax."""
    logits = jnp.dot(zsel_ref[...], w_ref[...], preferred_element_type=jnp.float32)
    _finish_tile(logits, bias_ref, o_ref, apply_softmax, masked)


def _dma_kernel(tile_m, apply_softmax, masked,
                nl_ref, z_hbm, w_ref, bias_ref, o_ref, zbuf, sems):
    """In-kernel row gather (double-buffered manual DMAs) + matmul + softmax."""
    i = pl.program_id(0)
    n_steps = pl.num_programs(0)
    slot = i % 2

    def issue(tile_idx, slot_):
        base = tile_idx * tile_m

        @pl.loop(0, tile_m // _GATHER_UNROLL)
        def _(jj):
            j0 = jj * _GATHER_UNROLL
            for u in range(_GATHER_UNROLL):            # python-unrolled issue
                j = j0 + u
                row = nl_ref[base + j]                 # scalar read from SMEM
                pltpu.make_async_copy(
                    z_hbm.at[pl.ds(row, 1), :],
                    zbuf.at[slot_, pl.ds(j, 1), :],
                    sems.at[slot_]).start()

    # Prime slot 0 with this step's rows on the very first grid step.
    @pl.when(i == 0)
    def _():
        issue(0, 0)

    # Prefetch the next tile's rows into the other slot; the DMAs run while
    # the MXU/softmax below works on the current slot.
    @pl.when(i + 1 < n_steps)
    def _():
        issue(i + 1, 1 - slot)

    # Single wait for the whole slot: every row copy signals sems[slot] by its
    # byte count, so one descriptor covering the full slot drains them all.
    pltpu.make_async_copy(zbuf.at[slot], zbuf.at[slot], sems.at[slot]).wait()

    logits = jnp.dot(zbuf[slot], w_ref[...], preferred_element_type=jnp.float32)
    _finish_tile(logits, bias_ref, o_ref, apply_softmax, masked)


# --------------------------------------------------------------------------
# wrapper
# --------------------------------------------------------------------------
def multi_class_inner_product_decoder(z, weight, node_list, softmax=True, *,
                                      gather="auto", out_dtype=jnp.float32):
    """pred = softmax(z[node_list] @ weight, axis=1) - fused Pallas TPU kernel.

    gather: "auto" | "dma" (in-kernel row DMAs) | "take" (XLA gather + pipeline)
    """
    num_nodes, in_dim = z.shape
    in_dim_w, num_class = weight.shape
    assert in_dim == in_dim_w
    M = int(node_list.shape[0])

    z_itemsize = jnp.dtype(z.dtype).itemsize
    n_pad = _round_up(num_class, _LANE)                 # lane-dense class axis
    masked = bool(softmax) and (n_pad != num_class)

    w = weight
    if n_pad != num_class:
        w = jnp.pad(w, ((0, 0), (0, n_pad - num_class)))
    w = w.astype(z.dtype)                 # bf16 z -> bf16 W (f32 MXU accumulation)
    w_itemsize = jnp.dtype(w.dtype).itemsize

    # Additive mask for padded class columns (only read inside the kernel
    # when `masked` is True): 0 for valid columns, -1e30 for padding.
    bias = jnp.where(jnp.arange(n_pad)[None, :] < num_class,
                     0.0, -1e30).astype(jnp.float32)

    # ---- gather-path dispatch ------------------------------------------------
    row_bytes = in_dim * z_itemsize
    can_dma = (in_dim % _LANE == 0) and (row_bytes >= _MIN_DMA_ROW_BYTES)
    if gather == "auto":
        use_dma = can_dma
    elif gather == "dma":
        if not can_dma:
            raise ValueError("dma gather needs in_dim % 128 == 0 and rows >= 512 B")
        use_dma = True
    elif gather == "take":
        use_dma = False
    else:
        raise ValueError(f"unknown gather mode: {gather!r}")

    # ---- generation-aware tile / VMEM sizing ---------------------------------
    budget = _vmem_budget_bytes()
    # Cap DMA-path tiles at 512 rows: per-row descriptor issue dominates beyond
    # that and >1k outstanding DMAs just stalls the issue queue.
    cap_rows = 512 if use_dma else 1024
    tile_m, est = _pick_tile_m(M, in_dim, n_pad, z_itemsize, w_itemsize,
                               budget, cap_rows)
    vmem_limit = int(min(budget, max(est + (4 << 20), 32 << 20)))

    m_pad = _round_up(M, tile_m)
    nl = jnp.asarray(node_list, dtype=jnp.int32)
    if m_pad != M:
        nl = jnp.pad(nl, (0, m_pad - M))   # padded rows gather row 0; sliced off

    cost = pl.CostEstimate(
        flops=2 * m_pad * in_dim * n_pad,
        transcendentals=(m_pad * n_pad) if softmax else 0,
        bytes_accessed=(m_pad * in_dim * z_itemsize
                        + in_dim * n_pad * w_itemsize
                        + m_pad * n_pad * jnp.dtype(out_dtype).itemsize),
    )
    out_shape = jax.ShapeDtypeStruct((m_pad, n_pad), out_dtype)

    if use_dma:
        kernel = functools.partial(_dma_kernel, tile_m, bool(softmax), masked)
        out = pl.pallas_call(
            kernel,
            out_shape=out_shape,
            grid_spec=pltpu.PrefetchScalarGridSpec(
                num_scalar_prefetch=1,                       # node_list -> SMEM
                grid=(m_pad // tile_m,),
                in_specs=[
                    pl.BlockSpec(memory_space=pl.ANY),                    # z in HBM
                    pl.BlockSpec((in_dim, n_pad), lambda i, nl: (0, 0)),  # resident W
                    pl.BlockSpec((1, n_pad), lambda i, nl: (0, 0)),       # pad mask
                ],
                out_specs=pl.BlockSpec((tile_m, n_pad), lambda i, nl: (i, 0)),
                scratch_shapes=[
                    pltpu.VMEM((2, tile_m, in_dim), z.dtype),  # double-buffered rows
                    pltpu.SemaphoreType.DMA((2,)),             # one sem per slot
                ],
            ),
            # Cross-step prefetch carries DMA/semaphore state -> keep sequential.
            # TODO(synk): leading core-parallel grid axis for v7x megacore.
            compiler_params=pltpu.CompilerParams(
                dimension_semantics=("arbitrary",),
                vmem_limit_bytes=vmem_limit),
            cost_estimate=cost,
        )(nl, z, w, bias)
    else:
        # Small / non-lane-aligned rows: let XLA gather once, stream z_sel tiles
        # through the auto-pipeline (no per-row DMA descriptors at all).
        z_sel = jnp.take(z, nl, axis=0)
        kernel = functools.partial(_take_kernel, bool(softmax), masked)
        out = pl.pallas_call(
            kernel,
            out_shape=out_shape,
            grid_spec=pltpu.PrefetchScalarGridSpec(
                num_scalar_prefetch=0,
                grid=(m_pad // tile_m,),
                in_specs=[
                    pl.BlockSpec((tile_m, in_dim), lambda i: (i, 0)),
                    pl.BlockSpec((in_dim, n_pad), lambda i: (0, 0)),
                    pl.BlockSpec((1, n_pad), lambda i: (0, 0)),
                ],
                out_specs=pl.BlockSpec((tile_m, n_pad), lambda i: (i, 0)),
            ),
            compiler_params=pltpu.CompilerParams(
                dimension_semantics=("parallel",),            # megacore-shardable
                vmem_limit_bytes=vmem_limit),
            cost_estimate=cost,
        )(z_sel, w, bias)

    # Match the PyTorch module's output exactly (un-padded, f32 by default).
    return out[:M, :num_class]


def init_weight(key, in_dim, num_class):
    # reset_parameters(): uniform(-stdv, stdv), stdv = sqrt(6/(in_dim+num_class))
    stdv = np.sqrt(6.0 / (in_dim + num_class))
    return jax.random.uniform(key, (in_dim, num_class), dtype=jnp.float32,
                              minval=-stdv, maxval=stdv)


if __name__ == "__main__":
    key = jax.random.PRNGKey(0)
    k_z, k_w, k_z2, k_w2, k_nl2 = jax.random.split(key, 5)

    # ----------------- small shapes -> "take" (pipelined z_sel) path ----------
    num_nodes, in_dim, num_class = 16, 32, 8
    z = jax.random.normal(k_z, (num_nodes, in_dim), dtype=jnp.float32)
    weight = init_weight(k_w, in_dim, num_class)
    node_list = jnp.array([0, 3, 5, 7, 8, 10, 12, 15, 1, 2], dtype=jnp.int32)

    pred = jax.block_until_ready(
        multi_class_inner_product_decoder(z, weight, node_list, softmax=True))
    ref = jax.nn.softmax(z[node_list] @ weight, axis=1)
    np.testing.assert_allclose(np.asarray(pred), np.asarray(ref),
                               rtol=2e-3, atol=2e-3)
    assert pred.shape == (node_list.shape[0], num_class)

    logits = jax.block_until_ready(
        multi_class_inner_product_decoder(z, weight, node_list, softmax=False))
    np.testing.assert_allclose(np.asarray(logits),
                               np.asarray(z[node_list] @ weight),
                               rtol=1e-5, atol=1e-5)

    pred_bf16 = jax.block_until_ready(
        multi_class_inner_product_decoder(z.astype(jnp.bfloat16), weight,
                                          node_list, softmax=True))
    np.testing.assert_allclose(np.asarray(pred_bf16), np.asarray(ref),
                               rtol=3e-2, atol=3e-2)

    # ------------- larger, lane-aligned shapes -> in-kernel DMA-gather path ---
    num_nodes2, in_dim2, num_class2, M2 = 512, 256, 40, 300
    z2 = jax.random.normal(k_z2, (num_nodes2, in_dim2), dtype=jnp.float32)
    weight2 = init_weight(k_w2, in_dim2, num_class2)
    node_list2 = jax.random.randint(k_nl2, (M2,), 0, num_nodes2, dtype=jnp.int32)

    pred2 = jax.block_until_ready(
        multi_class_inner_product_decoder(z2, weight2, node_list2, softmax=True))
    ref2 = jax.nn.softmax(z2[node_list2] @ weight2, axis=1)
    np.testing.assert_allclose(np.asarray(pred2), np.asarray(ref2),
                               rtol=2e-3, atol=2e-3)
    assert pred2.shape == (M2, num_class2)

    # Both gather paths must agree on identical inputs.
    pred2_take = jax.block_until_ready(
        multi_class_inner_product_decoder(z2, weight2, node_list2, softmax=True,
                                          gather="take"))
    np.testing.assert_allclose(np.asarray(pred2), np.asarray(pred2_take),
                               rtol=1e-5, atol=1e-6)

    print("KERNEL_OK")
</pallas_src>

<mosaic_0001>
module attributes {stable_mosaic.version = 11 : i64} {
  func.func @_take_kernel(%arg0: i32, %arg1: memref<16x32xf32, #tpu.memory_space<vmem>>, %arg2: memref<32x128xf32, #tpu.memory_space<vmem>>, %arg3: memref<1x128xf32, #tpu.memory_space<vmem>>, %arg4: memref<16x128xf32, #tpu.memory_space<vmem>>) attributes {dimension_semantics = [#tpu.dimension_semantics<parallel>], iteration_bounds = array<i64: 1>, scalar_prefetch = 0 : i64, scratch_operands = 0 : i64, tpu.core_type = #tpu.core_type<tc>, window_params = [{transform_indices = @transform_0, window_bounds = array<i64: 16, 32>}, {pipeline_mode = #tpu.pipeline_mode<synchronous>, transform_indices = @transform_1, window_bounds = array<i64: 32, 128>}, {pipeline_mode = #tpu.pipeline_mode<synchronous>, transform_indices = @transform_2, window_bounds = array<i64: 1, 128>}, {transform_indices = @transform_3, window_bounds = array<i64: 16, 128>}]} {
    %c0 = arith.constant 0 : index
    %c0_0 = arith.constant 0 : index
    %0 = vector.load %arg1[%c0, %c0_0] : memref<16x32xf32, #tpu.memory_space<vmem>>, vector<16x32xf32>
    %c0_1 = arith.constant 0 : index
    %c0_2 = arith.constant 0 : index
    %1 = vector.load %arg2[%c0_1, %c0_2] : memref<32x128xf32, #tpu.memory_space<vmem>>, vector<32x128xf32>
    %cst = arith.constant dense<0.000000e+00> : vector<16x128xf32>
    %2 = tpu.matmul %0, %1, %cst {dimension_numbers = #tpu.dot_dimension_numbers<[1], [0], [0], [1], [0, 0, 1, 1], [], []>} : vector<16x32xf32>, vector<32x128xf32>, vector<16x128xf32> -> vector<16x128xf32>
    %c0_3 = arith.constant 0 : index
    %c0_4 = arith.constant 0 : index
    %3 = vector.load %arg3[%c0_3, %c0_4] : memref<1x128xf32, #tpu.memory_space<vmem>>, vector<1x128xf32>
    %4 = vector.broadcast %3 : vector<1x128xf32> to vector<16x128xf32>
    %5 = arith.addf %2, %4 : vector<16x128xf32>
    %cst_5 = arith.constant dense<0xFF800000> : vector<16xf32>
    %6 = vector.multi_reduction <maximumf>, %5, %cst_5 [1] : vector<16x128xf32> to vector<16xf32>
    %7 = vector.shape_cast %6 : vector<16xf32> to vector<16x1xf32>
    %8 = vector.broadcast %7 : vector<16x1xf32> to vector<16x128xf32>
    %9 = arith.subf %5, %8 : vector<16x128xf32>
    %10 = math.exp %9 : vector<16x128xf32>
    %cst_6 = arith.constant dense<0.000000e+00> : vector<16xf32>
    %11 = vector.multi_reduction <add>, %10, %cst_6 [1] : vector<16x128xf32> to vector<16xf32>
    %12 = vector.shape_cast %11 : vector<16xf32> to vector<16x1xf32>
    %13 = tpu.reciprocal %12 {approx = true} : vector<16x1xf32> -> vector<16x1xf32>
    %14 = vector.broadcast %13 : vector<16x1xf32> to vector<16x128xf32>
    %15 = arith.mulf %10, %14 : vector<16x128xf32>
    %c0_7 = arith.constant 0 : index
    %c0_8 = arith.constant 0 : index
    %16 = vector.load %arg4[%c0_7, %c0_8] : memref<16x128xf32, #tpu.memory_space<vmem>>, vector<16x128xf32>
    tpu.vector_store %arg4[%c0_7, %c0_8], %15 {strides = array<i32>} : memref<16x128xf32, #tpu.memory_space<vmem>>, vector<16x128xf32>,
    return
  }
  func.func @transform_0(%arg0: i32) -> (i32, i32) {
    %c0_i32 = arith.constant 0 : i32
    %c0_i32_0 = arith.constant 0 : i32
    return %arg0, %c0_i32 : i32, i32
  }
  func.func @transform_1(%arg0: i32) -> (i32, i32) {
    %c0_i32 = arith.constant 0 : i32
    %c0_i32_0 = arith.constant 0 : i32
    %c0_i32_1 = arith.constant 0 : i32
    return %c0_i32, %c0_i32_0 : i32, i32
  }
  func.func @transform_2(%arg0: i32) -> (i32, i32) {
    %c0_i32 = arith.constant 0 : i32
    %c0_i32_0 = arith.constant 0 : i32
    %c0_i32_1 = arith.constant 0 : i32
    return %c0_i32, %c0_i32_0 : i32, i32
  }
  func.func @transform_3(%arg0: i32) -> (i32, i32) {
    %c0_i32 = arith.constant 0 : i32
    %c0_i32_0 = arith.constant 0 : i32
    return %arg0, %c0_i32 : i32, i32
  }
}

</mosaic_0001>

<bundles_post_ra>
// kernel: tpu_custom_call.1
= control target key start
LH: loop header
LB: loop body
LE: loop exit
PB: predicated region body
PF: predicated region fallthrough
CT: control target
= control target key end

     0   :  { %8 = vsyncpa [#allocation3], 0  ;;  %s323_s0 = inlined_call_operand.hbm [shape: f32[16,32], index: 0, kind: input, shape index: {}]   ;;  %s324_s1 = inlined_call_operand.hbm [shape: f32[32,128], index: 1, kind: input, shape index: {}]   ;;  %s325_s2 = inlined_call_operand.vmem [shape: f32[1,128], index: 2, kind: input, shape index: {}]   ;;  %s326_s3 = inlined_call_operand.hbm [shape: f32[16,128], index: 3, kind: output, shape index: {}]  }
   0x1   :  { %9 = vsyncpa [#allocation6], 0 }
   0x2   :  { %10 = vsyncpa [#allocation4], 0  ;;  %s275_s12 = smov [#allocation2]  }
   0x3   :  { %s16_s13 = sshll.u32 %s275_s12, 4  ;;  %s17_s13 = int_to_ptr.vmem [resolvable:$true] %s16_s13 }
   0x4   :  { %s217_s14 = scalar_lea.vmem %s17_s13, 256  ;;  %p222_p1 = scmp.lt.s32.totalorder %s17_s13, %s17_s13 }
   0x5   :  { %p218_p0 = scmp.ne.s32.totalorder %s17_s13, %s217_s14  ;;  %p223_p2 = scmp.lt.s32.totalorder %s217_s14, %s217_s14 }
   0x7   :  { %p224_p3 = por %p223_p2, %p222_p1 }
   0x9   :  { %p225_p4 = pnand %p224_p3, %p218_p0 }
   0xb   :  { %228 = shalt.err (!%p225_p4)
}
   0xc   :  { %s276_s15 = smov 128   ;;  %s277_s16 = smov 8  }
   0xd   :  { %22 = dma.hbm_to_vmem [thread:$0]  %s323_s0, 256, %s17_s13, [#allocation3], %s276_s15, %s276_s15, %s277_s16  }
   0xe   :  { %s278_s19 = smov [#allocation5]  }
   0xf   :  { %s28_s20 = sshll.u32 %s278_s19, 4  ;;  %s29_s20 = int_to_ptr.vmem [resolvable:$true] %s28_s20 }
  0x10   :  { %s237_s21 = scalar_lea.vmem %s29_s20, 512  ;;  %p242_p6 = scmp.lt.s32.totalorder %s29_s20, %s29_s20 }
  0x11   :  { %p238_p5 = scmp.ne.s32.totalorder %s29_s20, %s237_s21  ;;  %p243_p7 = scmp.lt.s32.totalorder %s237_s21, %s237_s21 }
  0x13   :  { %p244_p8 = por %p243_p7, %p242_p6 }
  0x15   :  { %p245_p9 = pnand %p244_p8, %p238_p5 }
  0x17   :  { %248 = shalt.err (!%p245_p9)
}
  0x18   :  { %34 = dma.hbm_to_vmem [thread:$0]  %s324_s1, 512, %s29_s20, [#allocation6], %s276_s15, %s276_s15, %s277_s16  }
  0x19   :  { %269 = dma.done.wait [#allocation3], 256  }
  0x1a   :  { %270 = vsyncadd [#allocation3], 4294967040 }
  0x1b   :  { %271 = dma.done.wait [#allocation6], 512  }
  0x1c   :  { %272 = vsyncadd [#allocation6], 4294966784  ;;  %vm56_vm0 = vcmask 261120   ;;  %v48_v0 = vld [vmem:[#allocation5 + $0x18] sm:$0xff]  ;;  %v47_v1 = vld [vmem:[#allocation5 + $0x10] sm:$0xff] }
  0x1d   :  { %185 = vmatprep.subr.mxu0 %v48_v0  ;;  %v43_v2 = vld [vmem:[#allocation2] sm:$0xff]  ;;  %v46_v3 = vld [vmem:[#allocation5 + $0x8] sm:$0xff]  ;;  %v45_v4 = vld [vmem:[#allocation5] sm:$0xff] }
  0x1e   :  { %186 = vmatpush3.msra.mxu0 %v48_v0  ;;  %193 = vmatprep.mubr.msk.f32.mxu0 %vm56_vm0, %v43_v2  ;;  %v44_v5 = vld [vmem:[#allocation2 + $0x8] sm:$0xff]  ;;  %v176_v7 = vld [vmem:[%s325_s2] ss:$0 sm:$0xff]  ;;  %s279_s2 = smov [#allocation7]  }
  0x1f   :  { %187 = vmatprep.subr.mxu0 %v47_v1  ;;  %s163_s24 = sshll.u32 %s279_s2, 4  ;;  %s164_s24 = int_to_ptr.vmem [resolvable:$true] %s163_s24 }
  0x20   :  { %188 = vmatpush3.msra.mxu0 %v47_v1  ;;  %s249_s25 = scalar_lea.vmem %s164_s24, 256  ;;  %p254_p11 = scmp.lt.s32.totalorder %s164_s24, %s164_s24 }
  0x21   :  { %189 = vmatprep.subr.mxu0 %v46_v3  ;;  %p250_p10 = scmp.ne.s32.totalorder %s164_s24, %s249_s25  ;;  %p255_p12 = scmp.lt.s32.totalorder %s249_s25, %s249_s25 }
  0x22   :  { %190 = vmatpush3.msra.mxu0 %v46_v3 }
  0x23   :  { %191 = vmatprep.subr.mxu0 %v45_v4  ;;  %p256_p13 = por %p255_p12, %p254_p11 }
  0x24   :  { %192 = vmatpush3.msra.mxu0 %v45_v4 }
  0x25   :  { %194 = vmatmul.mubr.msk.f32.vlgmr.msra.gmra.mxu0 %vm56_vm0, %v44_v5  ;;  %p257_p0 = pnand %p256_p13, %p250_p10 }
  0xe5   :  { %v195_v6 = vpop.f32.mrf.mxu0 }
  0xe6   :  { %v135_v10 = vadd.f32 %v195_v6, %v176_v7 }
  0xe7   :  { %v129_v8 = vpop.f32.mrf.mxu0 }
  0xe8   :  { %v130_v9 = vadd.f32 %v176_v7, %v129_v8 }
  0xea   :  { %138 = vmax.xlane.f32.xlu0 %v130_v9 }
  0xee   :  { %140 = vmax.xlane.f32.xlu0 %v135_v10 }
 0x173   :  { %v139_v11 = vpop.xlane.xlu0 %138 }
 0x174   :  { %v142_v12 = vsub.f32 %v130_v9, %v139_v11 }
 0x176   :  { %v144_v13 = vmul.f32 1.442695, %v142_v12 }
 0x177   :  { %v141_v14 = vpop.xlane.xlu0 %140 }
 0x178   :  { %201 = vpow2.f32 %v144_v13  ;;  %v143_v15 = vsub.f32 %v135_v10, %v141_v14 }
 0x17a   :  { %v146_v16 = vmul.f32 1.442695, %v143_v15 }
 0x17c   :  { %203 = vpow2.f32 %v146_v16 }
 0x185   :  { %v202_v17 = vpop.eup %201 }
 0x186   :  { %148 = vadd.xlane.f32.xlu1 %v202_v17 }
 0x189   :  { %v204_v18 = vpop.eup %203 }
 0x18a   :  { %150 = vadd.xlane.f32.xlu1 %v204_v18 }
 0x20f   :  { %v149_v19 = vpop.xlane.xlu1 %148 }
 0x210   :  { %205 = vrcp.f32 %v149_v19 }
 0x213   :  { %v151_v20 = vpop.xlane.xlu1 %150 }
 0x214   :  { %207 = vrcp.f32 %v151_v20 }
 0x21d   :  { %v206_v21 = vpop.eup %205 }
 0x21e   :  { %v154_v22 = vmul.f32 %v206_v21, %v202_v17 }
 0x220   :  { %156 = vst [vmem:[#allocation7] sm:$0xff] %v154_v22 }
 0x221   :  { %v208_v23 = vpop.eup %207 }
 0x222   :  { %v155_v24 = vmul.f32 %v208_v23, %v204_v18 }
 0x224   :  { %157 = vst [vmem:[#allocation7 + $0x8] sm:$0xff] %v155_v24 }
 0x225   :  { %260 = shalt.err (!%p257_p0)
}
 0x226   :  { %169 = dma.vmem_to_hbm [thread:$0]  %s164_s24, 256, %s326_s3, [#allocation4], %s276_s15, %s276_s15, %s277_s16  }
 0x227   :  { %273 = dma.done.wait [#allocation4], 256  }
 0x228   :  { %274 = vsyncadd [#allocation4], 4294967040 }
 0x229   :  { %173 = vsyncpa [#allocation3], 1 }
 0x22a   :  { %174 = vsyncpa [#allocation6], 1 }
 0x22b   :  { %175 = vsyncpa [#allocation4], 1 }

</bundles_post_ra>
